<compile_context>
chip_gen: v7x
topology: tpu7x:2x2x1
jax: 0.10.0
libtpu: 0.0.40
codegen_flags: <defaults>
</compile_context>

<pallas_src>
import functools

import jax
import jax.numpy as jnp
import numpy as np
from jax.experimental import pallas as pl
from jax.experimental.pallas import tpu as pltpu


def _dice_partial_kernel(logits_ref, targets_ref, inter_ref, card_ref, *,
                         s_total, tile_s, tiles_per_chunk, needs_mask):
    p = pl.program_id(1)          # spatial mega-chunk (parallel -> megacore)
    j = pl.program_id(2)          # spatial tile within the chunk (reduction)

    # Zero the resident per-(batch, chunk) accumulators on the first tile.
    @pl.when(j == 0)
    def _():
        inter_ref[...] = jnp.zeros_like(inter_ref)
        card_ref[...] = jnp.zeros_like(card_ref)

    logits = logits_ref[...].astype(jnp.float32)          # (C, TILE_S)
    tgt = targets_ref[...].astype(jnp.int32)              # (1, TILE_S)
    num_classes = logits.shape[0]

    # Softmax over the class (sublane) axis.
    m = jnp.max(logits, axis=0, keepdims=True)            # (1, TILE_S)
    e = jnp.exp(logits - m)                               # (C, TILE_S)
    denom = jnp.sum(e, axis=0, keepdims=True)             # (1, TILE_S)
    r = pl.reciprocal(denom, approx=True)                 # EUP slot, off VALU
    r = r * (2.0 - denom * r)                             # one Newton step -> ~f32 accuracy
    probs = e * r                                         # (C, TILE_S)

    # One-hot membership as a boolean mask: (C, 1) iota broadcast vs (1, T).
    class_ids = jax.lax.broadcasted_iota(jnp.int32, (num_classes, 1), 0)
    onehot = class_ids == tgt                              # (C, TILE_S) bool

    def accumulate(sel, pr):
        # Fused: no float one-hot / probs*onehot / probs+onehot temporaries.
        inter_ref[...] += jnp.sum(jnp.where(sel, pr, 0.0), axis=-1, keepdims=True)
        card_ref[...] += (jnp.sum(pr, axis=-1, keepdims=True)
                          + jnp.sum(jnp.where(sel, 1.0, 0.0), axis=-1, keepdims=True))

    if needs_mask:
        # Only the globally-last (possibly OOB-clamped) tile needs masking;
        # gate it so steady-state tiles pay no extra VPU work.
        g = p * tiles_per_chunk + j                        # unclamped global tile
        is_partial = (g + 1) * tile_s > s_total

        @pl.when(jnp.logical_not(is_partial))
        def _():
            accumulate(onehot, probs)

        @pl.when(is_partial)
        def _():
            col = g * tile_s + jax.lax.broadcasted_iota(jnp.int32, (1, tile_s), 1)
            valid = col < s_total                          # (1, TILE_S)
            accumulate(jnp.logical_and(onehot, valid),
                       jnp.where(valid, probs, 0.0))
    else:
        accumulate(onehot, probs)


def _vmem_limit_bytes():
    """Explicit scoped-VMEM limit that is safe across v5e/v6e/v7x."""
    try:
        phys = int(pltpu.get_tpu_info().vmem_capacity_bytes)
    except Exception:
        phys = 64 * 1024 * 1024            # conservative: v7x per-core VMEM
    # 3/4 of detected capacity, capped at 48 MiB so a per-chip (rather than
    # per-core) report can never push the limit past v7x's 64 MiB physical.
    return int(min((phys * 3) // 4, 48 * 1024 * 1024))


def _pick_tile(spatial, num_classes, logit_bytes, tgt_bytes, max_tile, budget):
    """Largest lane tile (multiple of 128) whose double-buffered inputs plus
    in-kernel f32 temporaries fit within `budget` bytes of VMEM."""
    # Per lane column: 2x double-buffered inputs + ~4 live (C, TILE_S) f32
    # temporaries (upcast logits, exp, probs, select temp).
    per_lane = 2 * (num_classes * logit_bytes + tgt_bytes) + 16 * num_classes
    cap = max(128, min(budget // per_lane, max_tile))
    cap = (cap // 128) * 128
    if spatial <= cap:
        return max(128, ((spatial + 127) // 128) * 128)    # one (maybe masked) tile
    for t in range(cap, 127, -128):                        # prefer an exact divisor
        if spatial % t == 0:
            return t
    return cap                                             # masked tail tile


def dice_loss_pallas(logits, targets, smooth=1.0, max_tile=262144):
    """logits: (N, C, *spatial) float; targets: (N, *spatial) int -> scalar."""
    N, C = logits.shape[0], logits.shape[1]
    spatial = int(np.prod(logits.shape[2:])) if logits.ndim > 2 else 1

    # Free reshapes (contiguous, no transpose): C on sublanes, flattened
    # spatial on lanes.  Narrow targets to int8 when C fits, cutting HBM
    # reads; the (1, TILE_S) block is exempt from sublane packing rules.
    tgt_dtype = jnp.int8 if C <= 127 else jnp.int32
    logits3 = logits.reshape(N, C, spatial)
    targets3 = targets.reshape(N, 1, spatial).astype(tgt_dtype)

    vmem_limit = _vmem_limit_bytes()
    tile_budget = (vmem_limit * 3) // 4
    tile_s = _pick_tile(spatial, C, jnp.dtype(logits.dtype).itemsize,
                        jnp.dtype(tgt_dtype).itemsize, max_tile, tile_budget)

    t_total = pl.cdiv(spatial, tile_s)
    num_chunks = 2 if t_total >= 2 else 1       # 2nd parallel axis: megacore coverage
    tpc = pl.cdiv(t_total, num_chunks)          # spatial tiles per chunk
    grid = (N, num_chunks, tpc)
    needs_mask = (spatial % tile_s != 0) or (t_total % num_chunks != 0)
    t_last = t_total - 1

    def in_map(n, p, j):
        # Clamp fully-OOB tiles (odd tile counts); the kernel masks them out.
        return (n, 0, jnp.minimum(p * tpc + j, t_last))

    kernel = functools.partial(_dice_partial_kernel, s_total=spatial,
                               tile_s=tile_s, tiles_per_chunk=tpc,
                               needs_mask=needs_mask)

    inter_part, card_part = pl.pallas_call(
        kernel,
        out_shape=(
            jax.ShapeDtypeStruct((N, num_chunks, C, 1), jnp.float32),
            jax.ShapeDtypeStruct((N, num_chunks, C, 1), jnp.float32),
        ),
        grid_spec=pltpu.PrefetchScalarGridSpec(
            num_scalar_prefetch=0,
            grid=grid,
            in_specs=[
                pl.BlockSpec((None, C, tile_s), in_map),      # logits
                pl.BlockSpec((None, 1, tile_s), in_map),      # targets
            ],
            out_specs=[
                pl.BlockSpec((None, None, C, 1), lambda n, p, j: (n, p, 0, 0)),
                pl.BlockSpec((None, None, C, 1), lambda n, p, j: (n, p, 0, 0)),
            ],
        ),
        compiler_params=pltpu.CompilerParams(
            dimension_semantics=("parallel", "parallel", "arbitrary"),
            vmem_limit_bytes=vmem_limit,
        ),
    )(logits3, targets3)

    # Tiny O(N*C) finalize in plain JAX.
    inter = jnp.sum(inter_part, axis=(0, 1, 3))               # (C,)
    card = jnp.sum(card_part, axis=(0, 1, 3))                 # (C,)
    dice = (2.0 * inter + smooth) / (card + smooth)
    return 1.0 - jnp.mean(dice)


def dice_loss_ref(logits, targets, smooth=1.0):
    """Pure-JAX reference mirroring the PyTorch module."""
    C = logits.shape[1]
    probs = jax.nn.softmax(logits, axis=1)
    onehot = jax.nn.one_hot(targets, C, axis=1, dtype=probs.dtype)
    red_axes = (0,) + tuple(range(2, logits.ndim))
    inter = jnp.sum(probs * onehot, axis=red_axes)
    card = jnp.sum(probs + onehot, axis=red_axes)
    dice = (2.0 * inter + smooth) / (card + smooth)
    return 1.0 - jnp.mean(dice)


if __name__ == "__main__":
    key = jax.random.PRNGKey(0)
    k1, k2, k3, k4 = jax.random.split(key, 4)

    # 2-D case (N, C, H, W)
    N, C, H, W = 2, 4, 16, 16
    logits = jax.random.normal(k1, (N, C, H, W), dtype=jnp.float32)
    targets = jax.random.randint(k2, (N, H, W), 0, C, dtype=jnp.int32)

    loss = jax.block_until_ready(dice_loss_pallas(logits, targets, smooth=1.0))
    ref = jax.block_until_ready(dice_loss_ref(logits, targets, smooth=1.0))
    assert np.allclose(np.asarray(loss), np.asarray(ref), rtol=1e-5, atol=1e-5), (
        f"pallas={float(loss)} ref={float(ref)}")

    # 3-D volumetric case (V-Net style): (N, C, D, H, W)
    logits3d = jax.random.normal(k3, (2, 4, 8, 8, 8), dtype=jnp.float32)
    targets3d = jax.random.randint(k4, (2, 8, 8, 8), 0, 4, dtype=jnp.int32)
    loss3d = jax.block_until_ready(dice_loss_pallas(logits3d, targets3d, smooth=1.0))
    ref3d = jax.block_until_ready(dice_loss_ref(logits3d, targets3d, smooth=1.0))
    assert np.allclose(np.asarray(loss3d), np.asarray(ref3d), rtol=1e-5, atol=1e-5), (
        f"pallas={float(loss3d)} ref={float(ref3d)}")

    print("KERNEL_OK")
</pallas_src>

<mosaic_0001>
module attributes {stable_mosaic.version = 11 : i64} {
  func.func @_dice_partial_kernel(%arg0: i32, %arg1: i32, %arg2: i32, %arg3: memref<1x4x256xf32, #tpu.memory_space<vmem>>, %arg4: memref<1x1x256xi8, #tpu.memory_space<vmem>>, %arg5: memref<1x1x4x1xf32, #tpu.memory_space<vmem>>, %arg6: memref<1x1x4x1xf32, #tpu.memory_space<vmem>>) attributes {dimension_semantics = [#tpu.dimension_semantics<parallel>, #tpu.dimension_semantics<parallel>, #tpu.dimension_semantics<arbitrary>], iteration_bounds = array<i64: 2, 1, 1>, scalar_prefetch = 0 : i64, scratch_operands = 0 : i64, tpu.core_type = #tpu.core_type<tc>, window_params = [{transform_indices = @transform_0, window_bounds = array<i64: 1, 4, 256>}, {transform_indices = @transform_1, window_bounds = array<i64: 1, 1, 256>}, {transform_indices = @transform_2, window_bounds = array<i64: 1, 1, 4, 1>}, {transform_indices = @transform_3, window_bounds = array<i64: 1, 1, 4, 1>}]} {
    %c0_i32 = arith.constant 0 : i32
    %0 = arith.cmpi eq, %arg2, %c0_i32 : i32
    %1 = arith.extui %0 : i1 to i32
    %c0_i32_0 = arith.constant 0 : i32
    %2 = arith.cmpi ne, %1, %c0_i32_0 : i32
    scf.if %2 {
      %cst_30 = arith.constant 0.000000e+00 : f32
      %50 = vector.broadcast %cst_30 : f32 to vector<4x1xf32>
      %c0_31 = arith.constant 0 : index
      %c0_32 = arith.constant 0 : index
      %c0_33 = arith.constant 0 : index
      %c0_34 = arith.constant 0 : index
      %51 = vector.load %arg5[%c0_31, %c0_32, %c0_33, %c0_34] : memref<1x1x4x1xf32, #tpu.memory_space<vmem>>, vector<1x1x4x1xf32>
      %52 = vector.shape_cast %51 : vector<1x1x4x1xf32> to vector<4x1xf32>
      %53 = vector.shape_cast %50 : vector<4x1xf32> to vector<1x1x4x1xf32>
      tpu.vector_store %arg5[%c0_31, %c0_32, %c0_33, %c0_34], %53 {strides = array<i32>} : memref<1x1x4x1xf32, #tpu.memory_space<vmem>>, vector<1x1x4x1xf32>,
      %cst_35 = arith.constant 0.000000e+00 : f32
      %54 = vector.broadcast %cst_35 : f32 to vector<4x1xf32>
      %c0_36 = arith.constant 0 : index
      %c0_37 = arith.constant 0 : index
      %c0_38 = arith.constant 0 : index
      %c0_39 = arith.constant 0 : index
      %55 = vector.load %arg6[%c0_36, %c0_37, %c0_38, %c0_39] : memref<1x1x4x1xf32, #tpu.memory_space<vmem>>, vector<1x1x4x1xf32>
      %56 = vector.shape_cast %55 : vector<1x1x4x1xf32> to vector<4x1xf32>
      %57 = vector.shape_cast %54 : vector<4x1xf32> to vector<1x1x4x1xf32>
      tpu.vector_store %arg6[%c0_36, %c0_37, %c0_38, %c0_39], %57 {strides = array<i32>} : memref<1x1x4x1xf32, #tpu.memory_space<vmem>>, vector<1x1x4x1xf32>,
    } else {
    }
    %c0 = arith.constant 0 : index
    %c0_1 = arith.constant 0 : index
    %c0_2 = arith.constant 0 : index
    %3 = vector.load %arg3[%c0, %c0_1, %c0_2] : memref<1x4x256xf32, #tpu.memory_space<vmem>>, vector<1x4x256xf32>
    %4 = vector.shape_cast %3 : vector<1x4x256xf32> to vector<4x256xf32>
    %c0_3 = arith.constant 0 : index
    %c0_4 = arith.constant 0 : index
    %c0_5 = arith.constant 0 : index
    %5 = vector.load %arg4[%c0_3, %c0_4, %c0_5] : memref<1x1x256xi8, #tpu.memory_space<vmem>>, vector<1x1x256xi8>
    %6 = vector.shape_cast %5 : vector<1x1x256xi8> to vector<1x256xi8>
    %7 = arith.extsi %6 : vector<1x256xi8> to vector<1x256xi32>
    %cst = arith.constant dense<0xFF800000> : vector<256xf32>
    %8 = vector.multi_reduction <maximumf>, %4, %cst [0] : vector<4x256xf32> to vector<256xf32>
    %9 = vector.shape_cast %8 : vector<256xf32> to vector<1x256xf32>
    %10 = vector.broadcast %9 : vector<1x256xf32> to vector<4x256xf32>
    %11 = arith.subf %4, %10 : vector<4x256xf32>
    %12 = math.exp %11 : vector<4x256xf32>
    %cst_6 = arith.constant dense<0.000000e+00> : vector<256xf32>
    %13 = vector.multi_reduction <add>, %12, %cst_6 [0] : vector<4x256xf32> to vector<256xf32>
    %14 = vector.shape_cast %13 : vector<256xf32> to vector<1x256xf32>
    %15 = tpu.reciprocal %14 {approx = true} : vector<1x256xf32> -> vector<1x256xf32>
    %16 = arith.mulf %14, %15 : vector<1x256xf32>
    %cst_7 = arith.constant 2.000000e+00 : f32
    %17 = vector.broadcast %cst_7 : f32 to vector<1x256xf32>
    %18 = arith.subf %17, %16 : vector<1x256xf32>
    %19 = arith.mulf %15, %18 : vector<1x256xf32>
    %20 = vector.broadcast %19 : vector<1x256xf32> to vector<4x256xf32>
    %21 = arith.mulf %12, %20 : vector<4x256xf32>
    %22 = tpu.iota {dimensions = array<i32: 0>} : vector<4x1xi32>
    %23 = vector.broadcast %22 : vector<4x1xi32> to vector<4x256xi32>
    %24 = vector.broadcast %7 : vector<1x256xi32> to vector<4x256xi32>
    %25 = arith.cmpi eq, %23, %24 : vector<4x256xi32>
    %c0_8 = arith.constant 0 : index
    %c0_9 = arith.constant 0 : index
    %c0_10 = arith.constant 0 : index
    %c0_11 = arith.constant 0 : index
    %26 = vector.load %arg5[%c0_8, %c0_9, %c0_10, %c0_11] : memref<1x1x4x1xf32, #tpu.memory_space<vmem>>, vector<1x1x4x1xf32>
    %27 = vector.shape_cast %26 : vector<1x1x4x1xf32> to vector<4x1xf32>
    %cst_12 = arith.constant 0.000000e+00 : f32
    %28 = vector.broadcast %cst_12 : f32 to vector<4x256xf32>
    %29 = arith.select %25, %21, %28 : vector<4x256xi1>, vector<4x256xf32>
    %cst_13 = arith.constant dense<0.000000e+00> : vector<4xf32>
    %30 = vector.multi_reduction <add>, %29, %cst_13 [1] : vector<4x256xf32> to vector<4xf32>
    %31 = vector.shape_cast %30 : vector<4xf32> to vector<4x1xf32>
    %32 = arith.addf %27, %31 : vector<4x1xf32>
    %c0_14 = arith.constant 0 : index
    %c0_15 = arith.constant 0 : index
    %c0_16 = arith.constant 0 : index
    %c0_17 = arith.constant 0 : index
    %33 = vector.load %arg5[%c0_14, %c0_15, %c0_16, %c0_17] : memref<1x1x4x1xf32, #tpu.memory_space<vmem>>, vector<1x1x4x1xf32>
    %34 = vector.shape_cast %33 : vector<1x1x4x1xf32> to vector<4x1xf32>
    %35 = vector.shape_cast %32 : vector<4x1xf32> to vector<1x1x4x1xf32>
    tpu.vector_store %arg5[%c0_14, %c0_15, %c0_16, %c0_17], %35 {strides = array<i32>} : memref<1x1x4x1xf32, #tpu.memory_space<vmem>>, vector<1x1x4x1xf32>,
    %c0_18 = arith.constant 0 : index
    %c0_19 = arith.constant 0 : index
    %c0_20 = arith.constant 0 : index
    %c0_21 = arith.constant 0 : index
    %36 = vector.load %arg6[%c0_18, %c0_19, %c0_20, %c0_21] : memref<1x1x4x1xf32, #tpu.memory_space<vmem>>, vector<1x1x4x1xf32>
    %37 = vector.shape_cast %36 : vector<1x1x4x1xf32> to vector<4x1xf32>
    %cst_22 = arith.constant dense<0.000000e+00> : vector<4xf32>
    %38 = vector.multi_reduction <add>, %21, %cst_22 [1] : vector<4x256xf32> to vector<4xf32>
    %39 = vector.shape_cast %38 : vector<4xf32> to vector<4x1xf32>
    %cst_23 = arith.constant 1.000000e+00 : f32
    %cst_24 = arith.constant 0.000000e+00 : f32
    %40 = vector.broadcast %cst_23 : f32 to vector<4x256xf32>
    %41 = vector.broadcast %cst_24 : f32 to vector<4x256xf32>
    %42 = arith.select %25, %40, %41 : vector<4x256xi1>, vector<4x256xf32>
    %cst_25 = arith.constant dense<0.000000e+00> : vector<4xf32>
    %43 = vector.multi_reduction <add>, %42, %cst_25 [1] : vector<4x256xf32> to vector<4xf32>
    %44 = vector.shape_cast %43 : vector<4xf32> to vector<4x1xf32>
    %45 = arith.addf %39, %44 : vector<4x1xf32>
    %46 = arith.addf %37, %45 : vector<4x1xf32>
    %c0_26 = arith.constant 0 : index
    %c0_27 = arith.constant 0 : index
    %c0_28 = arith.constant 0 : index
    %c0_29 = arith.constant 0 : index
    %47 = vector.load %arg6[%c0_26, %c0_27, %c0_28, %c0_29] : memref<1x1x4x1xf32, #tpu.memory_space<vmem>>, vector<1x1x4x1xf32>
    %48 = vector.shape_cast %47 : vector<1x1x4x1xf32> to vector<4x1xf32>
    %49 = vector.shape_cast %46 : vector<4x1xf32> to vector<1x1x4x1xf32>
    tpu.vector_store %arg6[%c0_26, %c0_27, %c0_28, %c0_29], %49 {strides = array<i32>} : memref<1x1x4x1xf32, #tpu.memory_space<vmem>>, vector<1x1x4x1xf32>,
    return
  }
  func.func @transform_0(%arg0: i32, %arg1: i32, %arg2: i32) -> (i32, i32, i32) {
    %c1_i32 = arith.constant 1 : i32
    %0 = arith.muli %arg1, %c1_i32 : i32
    %1 = arith.addi %0, %arg2 : i32
    %c0_i32 = arith.constant 0 : i32
    %2 = arith.minsi %1, %c0_i32 : i32
    %c0_i32_0 = arith.constant 0 : i32
    %c0_i32_1 = arith.constant 0 : i32
    return %arg0, %c0_i32_0, %2 : i32, i32, i32
  }
  func.func @transform_1(%arg0: i32, %arg1: i32, %arg2: i32) -> (i32, i32, i32) {
    %c1_i32 = arith.constant 1 : i32
    %0 = arith.muli %arg1, %c1_i32 : i32
    %1 = arith.addi %0, %arg2 : i32
    %c0_i32 = arith.constant 0 : i32
    %2 = arith.minsi %1, %c0_i32 : i32
    %c0_i32_0 = arith.constant 0 : i32
    %c0_i32_1 = arith.constant 0 : i32
    return %arg0, %c0_i32_0, %2 : i32, i32, i32
  }
  func.func @transform_2(%arg0: i32, %arg1: i32, %arg2: i32) -> (i32, i32, i32, i32) {
    %c0_i32 = arith.constant 0 : i32
    %c0_i32_0 = arith.constant 0 : i32
    %c0_i32_1 = arith.constant 0 : i32
    return %arg0, %arg1, %c0_i32, %c0_i32_0 : i32, i32, i32, i32
  }
  func.func @transform_3(%arg0: i32, %arg1: i32, %arg2: i32) -> (i32, i32, i32, i32) {
    %c0_i32 = arith.constant 0 : i32
    %c0_i32_0 = arith.constant 0 : i32
    %c0_i32_1 = arith.constant 0 : i32
    return %arg0, %arg1, %c0_i32, %c0_i32_0 : i32, i32, i32, i32
  }
}

</mosaic_0001>

<bundles_post_ra>
// kernel: tpu_custom_call.1
= control target key start
LH: loop header
LB: loop body
LE: loop exit
PB: predicated region body
PF: predicated region fallthrough
CT: control target
= control target key end

     0   :  { %9 = vsyncpa [#allocation3], 0  ;;  %s891_s0 = inlined_call_operand.hbm [shape: f32[2,4,256], index: 0, kind: input, shape index: {}]   ;;  %s892_s1 = inlined_call_operand.vmem [shape: s8[2,1,256], index: 1, kind: input, shape index: {}]   ;;  %s893_s2 = inlined_call_operand.vmem [shape: f32[2,1,4,1], index: 2, kind: output, shape index: {0}]   ;;  %s894_s3 = inlined_call_operand.vmem [shape: f32[2,1,4,1], index: 3, kind: output, shape index: {1}]  }
   0x1   :  { %11 = vsyncpa [#allocation3 + $0x1], 0  ;;  %s746_s12 = smov 0   ;;  %s748_s13 = smov 0  }
   0x2   :  { %s750_s14 = smov 0   ;;  %s752_s15 = smov 0  }
   0x3   :  { %s754_s16 = smov 0   ;;  %s756_s17 = smov 0  }
   0x4 LB: > { %s564_s18 = sadd.s32 4294967295, %s722_s17   ;;  %s36_s19 = sadd.s32 1, %s718_s16  ;;  %s722_s17 = sphi %s756_s17, %s17_s17   ;;  %s718_s16 = sphi %s754_s16, %s904_s16   ;;  %s714_s15 = sphi %s752_s15, %s903_s15   ;;  %s710_s14 = sphi %s750_s14, %s902_s14   ;;  %s706_s13 = sphi %s748_s13, %s901_s13   ;;  %s702_s12 = sphi %s746_s12, %s900_s12  }
   0x5   : > { %p38_p0 = scmp.ge.s32.totalorder %s36_s19, 2  ;;  %s51_s20 = sadd.s32 1, %s710_s14 }
   0x6   : > { %p58_p1 = scmp.ne.s32.totalorder %s710_s14, %s706_s13  ;;  %p59_p2 = scmp.eq.s32.totalorder %s722_s17, 0 }
   0x7   : > { %s906_s19 = smov (%p38_p0, %s36_s19), 0  ;;  %p64_p4 = scmp.ne.s32.totalorder %s706_s13, %s702_s12 }
   0x8   : > { %p782_p3 = por %p59_p2, %p58_p1  ;;  %s46_s22 = ssub.s32 %s718_s16, %s906_s19 }
   0x9   : > { %p65_p5 = scmp.eq.s32.totalorder %s564_s18, 0  ;;  %p49_p6 = scmp.eq.s32.totalorder %s46_s22, 0 }
   0xa   : > { %p585_p8 = scmp.lt.s32.totalorder %s722_s17, 2  ;;  %s178_s25 = sand.u32 1, %s710_s14  }
   0xb   : > { %p789_p7 = por %p65_p5, %p64_p4  ;;  %s578_s26 = sshll.u32 %s718_s16, 7 }
   0xc   : > { %s795_s24 = scalar_select %p49_p6, %s710_s14, %s51_s20  }
   0xd   : > { %s568_s27 = sshll.u32 %s178_s25, 3  ;;  %s802_s30 = scalar_lea.hbm %s891_s0, %s578_s26 }
   0xe   : > { %s182_s4 = scalar_lea.vmem [#allocation2], %s568_s27  ;;  %p806_p9 = pnand %p585_p8, %p782_p3 }
   0xf   : > { %s195_s5 = sshll.u32 %s182_s4, 4  ;;  %s179_s7 = scalar_lea.sflag [#allocation3], %s178_s25  ;;  %s810_s5 = int_to_ptr.vmem [resolvable:$true] %s195_s5 }
  0x10   : > { %s642_s8 = scalar_lea.hbm %s802_s30, 128  ;;  %p644_p13 = pneg %p806_p9 }
  0x11   : > { %p643_p12 = scmp.ne.s32.totalorder %s802_s30, %s642_s8  ;;  %s647_s11 = scalar_lea.hbm %s891_s0, 256 }
  0x12   : > { %p648_p2 = scmp.lt.u32.totalorder %s802_s30, %s891_s0  ;;  %p649_p3 = scmp.lt.u32.totalorder %s647_s11, %s642_s8 }
  0x13   : > { %p645_p0 = pnand %p644_p13, %p643_p12  ;;  %p651_p5 = scmp.lt.u32.totalorder %s642_s8, %s802_s30 }
  0x14   : > { %p650_p4 = por %p649_p3, %p648_p2 }
  0x15   : > { %p646_p1 = pneg %p645_p0 }
  0x16   : > { %p652_p6 = por %p651_p5, %p650_p4 }
  0x18   : > { %p653_p8 = pnand %p652_p6, %p646_p1 }
  0x1a   : > { %656 = shalt.err (!%p653_p8)
}
  0x1b   : > { %s657_s20 = scalar_lea.vmem %s810_s5, 128  ;;  %s724_s21 = smov [#allocation2]  }
  0x1c   : > { %p658_p12 = scmp.ne.s32.totalorder %s810_s5, %s657_s20  ;;  %s662_s22 = sshll.u32 %s724_s21, 4  ;;  %s663_s22 = int_to_ptr.vmem [resolvable:$false] %s662_s22 }
  0x1d   : > { %s664_s25 = scalar_lea.vmem %s663_s22, 256  ;;  %p665_p11 = scmp.lt.s32.totalorder %s810_s5, %s663_s22 }
  0x1e   : > { %p660_p0 = pnand %p658_p12, %p644_p13  ;;  %p666_p2 = scmp.lt.s32.totalorder %s664_s25, %s657_s20 }
  0x20   : > { %p661_p10 = pneg %p660_p0  ;;  %p667_p3 = por %p666_p2, %p665_p11 }
  0x22   : > { %p668_p4 = pnand %p667_p3, %p661_p10 }
  0x24   : > { %671 = shalt.err (!%p668_p4)
}
  0x25   : > { %584 = dma.hbm_to_vmem [thread:$0]  (!%p806_p9), %s802_s30, 128, %s810_s5, %s179_s7  }
  0x26   : > { %p898_p1 = scmp.lt.s32.totalorder %s722_s17, 3  ;;  %p899_p5 = scmp.ge.s32.totalorder %s722_s17, 1 }
  0x28   : > { %p219_p13 = pnand %p899_p5, %p898_p1 }
  0x29   : > { %s224_s26 = sand.u32 (!%p219_p13), 1, %s706_s13  }
  0x2a   : > { %222 = sbr.rel (%p219_p13) target bundleno = 275 (0x113), region = 28  ;;  %s572_s27 = sshll.u32 (!%p219_p13), %s224_s26, 3 }
  0x2b   : > { %s225_s28 = scalar_lea.sflag (!%p219_p13), [#allocation3], %s224_s26  ;;  %s228_s29 = scalar_lea.vmem (!%p219_p13), [#allocation2], %s572_s27 }
  0x31   : > { %697 = dma.done.wait (%p789_p7), %s225_s28, 128  }
  0x32   : > { %699 = vsyncadd (%p789_p7), %s225_s28, 4294967168  ;;  %vm317_vm0 = vcmask 1043456   ;;  %v311_v0 = vld [vmem:[%s228_s29] sm:$0xff]  ;;  %p279_p7 = scmp.lt.s32.totalorder %s714_s15, 1  ;;  %v369_v34 = vlaneseq  ;;  %v725_v55 = vmov 0.0   ;;  %vm308_vm3 = vcmask 3072  }
  0x33   : > { %v315_v1 = vcombine.high %v311_v0, %v311_v0  ;;  %v318_v2 = vsel %vm317_vm0, %v311_v0, -inf }
  0x34   : > { %v319_v3 = vrot.slane %v318_v2, 4  ;;  %s908_s15 = smov (!%p279_p7, %s714_s15), 1  ;;  %v370_v36 = vshrl.u32 %v369_v34, 7 }
  0x35   : > { %v325_v4 = vsel %vm317_vm0, %v315_v1, -inf  ;;  %s573_s23 = sshll.u32 %s908_s15, 1  ;;  %s574_s6 = sshll.u32 %s908_s15, 2 }
  0x36   : > { %v320_v5 = vmax.f32 %v318_v2, %v319_v3  ;;  %v326_v6 = vrot.slane %v325_v4, 4  ;;  %s285_s5 = scalar_lea.vmem %s892_s1, %s573_s23  ;;  %v373_v39 = vsub.s32 0, %v370_v36  ;;  %v377_v40 = vsub.s32 4, %v370_v36  ;;  %s303_s9 = scalar_lea.vmem %s894_s3, %s574_s6 }
  0x37   : > { %v312_v37 = vld [vmem:[%s285_s5] sm:$0x3]  ;;  %s296_s12 = scalar_lea.vmem %s893_s2, %s574_s6  ;;  %310 = vst.msk [vmem:[%s303_s9] sm:$0xf] %vm308_vm3, %v725_v55 }
  0x38   : > { %v321_v7 = vrot.slane %v320_v5, 2  ;;  %v327_v8 = vmax.f32 %v325_v4, %v326_v6  ;;  %v313_v38 = vunpack.c.0.s8 %v312_v37  ;;  %309 = vst.msk [vmem:[%s296_s12] sm:$0xf] %vm308_vm3, %v725_v55 }
  0x3a   : > { %v322_v9 = vmax.f32 %v320_v5, %v321_v7  ;;  %v328_v10 = vrot.slane %v327_v8, 2  ;;  %v374_v43 = vrot.slane %v313_v38, %v373_v39  ;;  %v378_v44 = vrot.slane %v313_v38, %v377_v40 }
  0x3c   : > { %v323_v11 = vrot.slane %v322_v9, 1  ;;  %v329_v12 = vmax.f32 %v327_v8, %v328_v10  ;;  %v382_v50 = vrot.slane %v374_v43, %v373_v39  ;;  %v386_v51 = vrot.slane %v378_v44, %v373_v39 }
  0x3e   : > { %v324_v13 = vmax.f32 %v322_v9, %v323_v11  ;;  %v330_v14 = vrot.slane %v329_v12, 1  ;;  %vm387_vm1 = vcmp.eq.s32.totalorder %v370_v36, %v382_v50  ;;  %vm388_vm2 = vcmp.eq.s32.totalorder %v370_v36, %v386_v51  ;;  %v403_v11 = vld [vmem:[%s303_s9] sm:$0xf] }
  0x3f   : > { %v409_v56 = vsel %vm387_vm1, 1.0, %v725_v55  ;;  %v410_v57 = vsel %vm388_vm2, 1.0, %v725_v55  ;;  %v389_v6 = vld [vmem:[%s296_s12] sm:$0xf] }
  0x40   : > { %v331_v15 = vmax.f32 %v329_v12, %v330_v14  ;;  %v411_v63 = vsel %vm317_vm0, %v409_v56, 0.0 }
  0x42   : > { %v334_v16 = vcombine.low %v324_v13, %v331_v15 }
  0x44   : > { %v336_v17 = vsub.f32 %v311_v0, %v334_v16  ;;  %v412_v0 = vsel %vm317_vm0, %v410_v57, 0.0 }
  0x45   : > { %v413_v5 = vadd.f32 %v412_v0, %v411_v63 }
  0x46   : > { %v337_v18 = vmul.f32 1.442695, %v336_v17 }
  0x48   : > { %636 = vpow2.f32 %v337_v18 }
  0x52   : > { %v637_v19 = vpop.eup %636 }
  0x53   : > { %v340_v20 = vcombine.high %v637_v19, %v637_v19  ;;  %v342_v21 = vsel %vm317_vm0, %v637_v19, 0.0 }
  0x54   : > { %v343_v22 = vrot.slane %v342_v21, 4 }
  0x55   : > { %v349_v23 = vsel %vm317_vm0, %v340_v20, 0.0 }
  0x56   : > { %v344_v24 = vadd.f32 %v343_v22, %v342_v21  ;;  %v350_v25 = vrot.slane %v349_v23, 4 }
  0x58   : > { %v345_v26 = vrot.slane %v344_v24, 2  ;;  %v351_v27 = vadd.f32 %v350_v25, %v349_v23 }
  0x5a   : > { %v346_v28 = vadd.f32 %v345_v26, %v344_v24  ;;  %v352_v29 = vrot.slane %v351_v27, 2 }
  0x5c   : > { %v347_v30 = vrot.slane %v346_v28, 1  ;;  %v353_v31 = vadd.f32 %v352_v29, %v351_v27 }
  0x5e   : > { %v348_v32 = vadd.f32 %v347_v30, %v346_v28  ;;  %v354_v33 = vrot.slane %v353_v31, 1 }
  0x60   : > { %v355_v35 = vadd.f32 %v354_v33, %v353_v31  ;;  %638 = vrcp.f32 %v348_v32 }
  0x62   : > { %640 = vrcp.f32 %v355_v35 }
  0x6a   : > { %v639_v41 = vpop.eup %638 }
  0x6b   : > { %v358_v42 = vmul.f32 %v639_v41, %v348_v32 }
  0x6c   : > { %v641_v45 = vpop.eup %640 }
  0x6d   : > { %v359_v46 = vmul.f32 %v641_v45, %v355_v35  ;;  %v360_v47 = vsub.f32 2.0, %v358_v42 }
  0x6f   : > { %v361_v48 = vsub.f32 2.0, %v359_v46  ;;  %v362_v49 = vmul.f32 %v639_v41, %v360_v47 }
  0x71   : > { %v363_v52 = vmul.f32 %v641_v45, %v361_v48 }
  0x73   : > { %v366_v53 = vcombine.low %v362_v49, %v363_v52 }
  0x75   : > { %v368_v54 = vmul.f32 %v637_v19, %v366_v53 }
  0x77   : > { %v391_v58 = vcombine.high %v368_v54, %v368_v54  ;;  %v404_v59 = vsel %vm317_vm0, %v368_v54, 0.0  ;;  %v393_v60 = vsel %vm387_vm1, %v368_v54, 0.0 }
  0x78   : > { %v395_v61 = vsel %vm317_vm0, %v393_v60, 0.0 }
  0x79   : > { %v405_v62 = vsel %vm317_vm0, %v391_v58, 0.0  ;;  %v394_v1 = vsel %vm388_vm2, %v391_v58, 0.0 }
  0x7a   : > { %v406_v2 = vadd.f32 %v405_v62, %v404_v59  ;;  %v396_v3 = vsel %vm317_vm0, %v394_v1, 0.0 }
  0x7b   : > { %v397_v4 = vadd.f32 %v396_v3, %v395_v61 }
  0x7c   : > { %407 = vadd.xlane.f32.xlu0 %v406_v2 }
  0x7d   : > { %398 = vadd.xlane.f32.xlu1 %v397_v4 }
  0x80   : > { %414 = vadd.xlane.f32.xlu0 %v413_v5 }
 0x109   : > { %v408_v7 = vpop.xlane.xlu0 %407 }
 0x10a   : > { %v399_v8 = vpop.xlane.xlu1 %398 }
 0x10b   : > { %v400_v9 = vadd.f32 %v399_v8, %v389_v6 }
 0x10d   : > { %v415_v10 = vpop.xlane.xlu0 %414  ;;  %402 = vst.msk [vmem:[%s296_s12] sm:$0xf] %vm308_vm3, %v400_v9 }
 0x10e   : > { %v416_v12 = vadd.f32 %v415_v10, %v408_v7 }
 0x110   : > { %v417_v13 = vadd.f32 %v416_v12, %v403_v11 }
 0x112   : > { %418 = vst.msk [vmem:[%s303_s9] sm:$0xf] %vm308_vm3, %v417_v13 }
 0x113 PF: > { %s17_s17 = sadd.s32 1, %s722_s17   ;;  %s900_s12 = smov %s706_s13 }
 0x114   : > { %p14_p9 = scmp.ge.s32.totalorder %s17_s17, 4   ;;  %s901_s13 = smov %s710_s14 }
 0x115   : > { %s902_s14 = smov %s795_s24  ;;  %s903_s15 = smov %s718_s16 }
 0x116   : > { %s904_s16 = smov %s906_s19  ;;  %16 = sbr.rel (!%p14_p9) target bundleno = 4 (0x4), region = 87 }
 0x11d   :  { %464 = vsyncpa [#allocation3], 1 }
 0x11e   :  { %466 = vsyncpa [#allocation3 + $0x1], 1 }

</bundles_post_ra>
